<compile_context>
chip_gen: v7x
topology: tpu7x:2x2x1
jax: 0.10.0
libtpu: 0.0.40
codegen_flags: <defaults>
</compile_context>

<pallas_src>
import functools

import jax
import jax.numpy as jnp
from jax.experimental import pallas as pl
from jax.experimental.pallas import tpu as pltpu


def _projection_kernel(x_ref, w_ref, b_ref, o_ref, *, matmul_dtype):
    x = x_ref[...]
    w = w_ref[...]
    if matmul_dtype is not None:
        x = x.astype(matmul_dtype)
        w = w.astype(matmul_dtype)

    # Linear: (tile_n, D) @ (D, V) on the MXU with f32 accumulation.
    logits = jnp.dot(x, w, preferred_element_type=jnp.float32)
    logits = logits + b_ref[...].astype(jnp.float32)

    # Numerically-stable log_softmax along the vocab (lane) axis.
    m = jnp.max(logits, axis=-1, keepdims=True)          # XLU lane reduce
    shifted = logits - m
    lse = jnp.log(jnp.sum(jnp.exp(shifted), axis=-1, keepdims=True))  # EUP + XLU
    o_ref[...] = (shifted - lse).astype(o_ref.dtype)


def projection_layer(x, weight, bias, *, matmul_dtype=None):
    """log_softmax(x @ weight.T + bias, axis=-1).

    x:      (B, S, D) float32
    weight: (V, D)    float32   (PyTorch nn.Linear layout)
    bias:   (V,)      float32
    """
    B, S, D = x.shape
    V = weight.shape[0]
    N = B * S

    x2d = x.reshape(N, D)
    w = weight.T                       # (D, V): lane-dense layout for the MXU
    b2d = bias.reshape(1, V)

    # --- tile-size selection against a VMEM budget (safe on v5e/v6e/v7x) ---
    budget = 32 * 1024 * 1024                     # scoped-VMEM safe on all chips
    fixed = (D * V + V) * 4 * 2                   # W + b (x2 headroom)
    per_row = (2 * D + 4 * V) * 4                 # 2x in bufs + 2x out bufs + temps
    if budget > fixed:
        tile = min(512, (budget - fixed) // per_row)
    else:
        tile = 8
    tile = max(8, (tile // 8) * 8)
    tile_n = int(min(tile, ((N + 7) // 8) * 8))   # multiple of 8, no bigger than N

    n_pad = pl.cdiv(N, tile_n) * tile_n
    if n_pad != N:
        x2d = jnp.pad(x2d, ((0, n_pad - N), (0, 0)))

    grid = (n_pad // tile_n,)

    cost = pl.CostEstimate(
        flops=2 * n_pad * D * V,
        transcendentals=n_pad * V,
        bytes_accessed=4 * (n_pad * D + D * V + V + n_pad * V),
    )
    vmem_limit = int(min(64 * 1024 * 1024,
                         max(16 * 1024 * 1024, fixed + per_row * tile_n)))

    kernel = functools.partial(_projection_kernel, matmul_dtype=matmul_dtype)

    out2d = pl.pallas_call(
        kernel,
        out_shape=jax.ShapeDtypeStruct((n_pad, V), x.dtype),
        grid=grid,
        in_specs=[
            pl.BlockSpec((tile_n, D), lambda i: (i, 0)),   # x rows (pipelined)
            pl.BlockSpec((D, V), lambda i: (0, 0)),        # W, VMEM-resident
            pl.BlockSpec((1, V), lambda i: (0, 0)),        # b, VMEM-resident
        ],
        out_specs=pl.BlockSpec((tile_n, V), lambda i: (i, 0)),
        compiler_params=pltpu.CompilerParams(
            dimension_semantics=("parallel",),
            vmem_limit_bytes=vmem_limit,
        ),
        cost_estimate=cost,
    )(x2d, w, b2d)

    return out2d[:N].reshape(B, S, V)


def _reference(x, weight, bias):
    logits = jnp.einsum("bsd,vd->bsv", x, weight) + bias
    return jax.nn.log_softmax(logits, axis=-1)


if __name__ == "__main__":
    B, S, D, V = 2, 8, 128, 256
    key = jax.random.PRNGKey(0)
    kx, kw, kb = jax.random.split(key, 3)

    x = jax.random.normal(kx, (B, S, D), dtype=jnp.float32)
    weight = jax.random.normal(kw, (V, D), dtype=jnp.float32) * 0.05
    bias = jax.random.normal(kb, (V,), dtype=jnp.float32) * 0.05

    # Exact (f32 MXU) run vs pure-JAX reference.
    out = projection_layer(x, weight, bias)
    jax.block_until_ready(out)
    ref = _reference(x, weight, bias)
    assert out.shape == (B, S, V)
    assert jnp.allclose(out, ref, atol=1e-4, rtol=1e-4), "mismatch vs reference"
    # Probabilities from log_softmax must sum to 1 per row.
    assert jnp.allclose(jnp.sum(jnp.exp(out), axis=-1), 1.0, atol=1e-3)

    # bf16-MXU variant (perf option); looser tolerance.
    out_bf16 = projection_layer(x, weight, bias, matmul_dtype=jnp.bfloat16)
    jax.block_until_ready(out_bf16)
    assert jnp.allclose(out_bf16, ref, atol=5e-2, rtol=5e-2), "bf16 mismatch"

    print("KERNEL_OK")
</pallas_src>

<mosaic_0001>
module attributes {stable_mosaic.version = 11 : i64} {
  func.func @_projection_kernel(%arg0: i32, %arg1: memref<16x128xf32, #tpu.memory_space<vmem>>, %arg2: memref<128x256xf32, #tpu.memory_space<vmem>>, %arg3: memref<1x256xf32, #tpu.memory_space<vmem>>, %arg4: memref<16x256xf32, #tpu.memory_space<vmem>>) attributes {dimension_semantics = [#tpu.dimension_semantics<parallel>], iteration_bounds = array<i64: 1>, scalar_prefetch = 0 : i64, scratch_operands = 0 : i64, tpu.core_type = #tpu.core_type<tc>, window_params = [{transform_indices = @transform_0, window_bounds = array<i64: 16, 128>}, {pipeline_mode = #tpu.pipeline_mode<synchronous>, transform_indices = @transform_1, window_bounds = array<i64: 128, 256>}, {pipeline_mode = #tpu.pipeline_mode<synchronous>, transform_indices = @transform_2, window_bounds = array<i64: 1, 256>}, {transform_indices = @transform_3, window_bounds = array<i64: 16, 256>}]} {
    %c0 = arith.constant 0 : index
    %c0_0 = arith.constant 0 : index
    %0 = vector.load %arg1[%c0, %c0_0] : memref<16x128xf32, #tpu.memory_space<vmem>>, vector<16x128xf32>
    %c0_1 = arith.constant 0 : index
    %c0_2 = arith.constant 0 : index
    %1 = vector.load %arg2[%c0_1, %c0_2] : memref<128x256xf32, #tpu.memory_space<vmem>>, vector<128x256xf32>
    %cst = arith.constant dense<0.000000e+00> : vector<16x256xf32>
    %2 = tpu.matmul %0, %1, %cst {dimension_numbers = #tpu.dot_dimension_numbers<[1], [0], [0], [1], [0, 0, 1, 1], [], []>} : vector<16x128xf32>, vector<128x256xf32>, vector<16x256xf32> -> vector<16x256xf32>
    %c0_3 = arith.constant 0 : index
    %c0_4 = arith.constant 0 : index
    %3 = vector.load %arg3[%c0_3, %c0_4] : memref<1x256xf32, #tpu.memory_space<vmem>>, vector<1x256xf32>
    %4 = vector.broadcast %3 : vector<1x256xf32> to vector<16x256xf32>
    %5 = arith.addf %2, %4 : vector<16x256xf32>
    %cst_5 = arith.constant dense<0xFF800000> : vector<16xf32>
    %6 = vector.multi_reduction <maximumf>, %5, %cst_5 [1] : vector<16x256xf32> to vector<16xf32>
    %7 = vector.shape_cast %6 : vector<16xf32> to vector<16x1xf32>
    %8 = vector.broadcast %7 : vector<16x1xf32> to vector<16x256xf32>
    %9 = arith.subf %5, %8 : vector<16x256xf32>
    %10 = math.exp %9 : vector<16x256xf32>
    %cst_6 = arith.constant dense<0.000000e+00> : vector<16xf32>
    %11 = vector.multi_reduction <add>, %10, %cst_6 [1] : vector<16x256xf32> to vector<16xf32>
    %12 = vector.shape_cast %11 : vector<16xf32> to vector<16x1xf32>
    %13 = math.log %12 : vector<16x1xf32>
    %14 = vector.broadcast %13 : vector<16x1xf32> to vector<16x256xf32>
    %15 = arith.subf %9, %14 : vector<16x256xf32>
    %c0_7 = arith.constant 0 : index
    %c0_8 = arith.constant 0 : index
    %16 = vector.load %arg4[%c0_7, %c0_8] : memref<16x256xf32, #tpu.memory_space<vmem>>, vector<16x256xf32>
    tpu.vector_store %arg4[%c0_7, %c0_8], %15 {strides = array<i32>} : memref<16x256xf32, #tpu.memory_space<vmem>>, vector<16x256xf32>,
    return
  }
  func.func @transform_0(%arg0: i32) -> (i32, i32) {
    %c0_i32 = arith.constant 0 : i32
    %c0_i32_0 = arith.constant 0 : i32
    return %arg0, %c0_i32 : i32, i32
  }
  func.func @transform_1(%arg0: i32) -> (i32, i32) {
    %c0_i32 = arith.constant 0 : i32
    %c0_i32_0 = arith.constant 0 : i32
    %c0_i32_1 = arith.constant 0 : i32
    return %c0_i32, %c0_i32_0 : i32, i32
  }
  func.func @transform_2(%arg0: i32) -> (i32, i32) {
    %c0_i32 = arith.constant 0 : i32
    %c0_i32_0 = arith.constant 0 : i32
    %c0_i32_1 = arith.constant 0 : i32
    return %c0_i32, %c0_i32_0 : i32, i32
  }
  func.func @transform_3(%arg0: i32) -> (i32, i32) {
    %c0_i32 = arith.constant 0 : i32
    %c0_i32_0 = arith.constant 0 : i32
    return %arg0, %c0_i32 : i32, i32
  }
}

</mosaic_0001>

<bundles_post_ra>
// kernel: tpu_custom_call.1
= control target key start
LH: loop header
LB: loop body
LE: loop exit
PB: predicated region body
PF: predicated region fallthrough
CT: control target
= control target key end

     0   :  { %8 = vsyncpa [#allocation3], 0  ;;  %s433_s0 = inlined_call_operand.hbm [shape: f32[16,128], index: 0, kind: input, shape index: {}]   ;;  %s434_s1 = inlined_call_operand.hbm [shape: f32[128,256], index: 1, kind: input, shape index: {}]   ;;  %s435_s2 = inlined_call_operand.vmem [shape: f32[1,256], index: 2, kind: input, shape index: {}]   ;;  %s436_s3 = inlined_call_operand.hbm [shape: f32[16,256], index: 3, kind: output, shape index: {}]  }
   0x1   :  { %9 = vsyncpa [#allocation6], 0 }
   0x2   :  { %10 = vsyncpa [#allocation4], 0  ;;  %s360_s12 = smov [#allocation2]   ;;  %s288_s16 = scalar_lea.hbm %s433_s0, 256 }
   0x3   :  { %s16_s13 = sshll.u32 %s360_s12, 4  ;;  %p289_p0 = scmp.ne.s32.totalorder %s433_s0, %s288_s16  ;;  %s17_s13 = int_to_ptr.vmem [resolvable:$true] %s16_s13 }
   0x4   :  { %p292_p1 = scmp.lt.u32.totalorder %s288_s16, %s433_s0 }
   0x6   :  { %p294_p2 = pnand %p292_p1, %p289_p0 }
   0x8   :  { %297 = shalt.err (!%p294_p2)
}
   0x9   :  { %s298_s21 = scalar_lea.vmem %s17_s13, 256  ;;  %p303_p4 = scmp.lt.s32.totalorder %s17_s13, %s17_s13 }
   0xa   :  { %p299_p3 = scmp.ne.s32.totalorder %s17_s13, %s298_s21  ;;  %p304_p5 = scmp.lt.s32.totalorder %s298_s21, %s298_s21 }
   0xc   :  { %p305_p6 = por %p304_p5, %p303_p4 }
   0xe   :  { %p306_p7 = pnand %p305_p6, %p299_p3 }
  0x10   :  { %309 = shalt.err (!%p306_p7)
}
  0x11   :  { %s361_s22 = smov 128   ;;  %s362_s23 = smov 8  }
  0x12   :  { %22 = dma.hbm_to_vmem [thread:$0]  %s433_s0, 256, %s17_s13, [#allocation3], %s361_s22, %s361_s22, %s362_s23  }
  0x13   :  { %s363_s26 = smov [#allocation5]   ;;  %s310_s30 = scalar_lea.hbm %s434_s1, 4096 }
  0x14   :  { %s28_s27 = sshll.u32 %s363_s26, 4  ;;  %p311_p8 = scmp.ne.s32.totalorder %s434_s1, %s310_s30  ;;  %s29_s27 = int_to_ptr.vmem [resolvable:$true] %s28_s27 }
  0x15   :  { %p314_p9 = scmp.lt.u32.totalorder %s310_s30, %s434_s1 }
  0x17   :  { %p316_p10 = pnand %p314_p9, %p311_p8 }
  0x19   :  { %319 = shalt.err (!%p316_p10)
}
  0x1a   :  { %s320_s8 = scalar_lea.vmem %s29_s27, 4096  ;;  %p325_p12 = scmp.lt.s32.totalorder %s29_s27, %s29_s27 }
  0x1b   :  { %p321_p11 = scmp.ne.s32.totalorder %s29_s27, %s320_s8  ;;  %p326_p13 = scmp.lt.s32.totalorder %s320_s8, %s320_s8 }
  0x1d   :  { %p327_p0 = por %p326_p13, %p325_p12 }
  0x1f   :  { %p328_p1 = pnand %p327_p0, %p321_p11 }
  0x21   :  { %331 = shalt.err (!%p328_p1)
}
  0x22   :  { %s364_s0 = smov 256   ;;  %s365_s9 = smov 16  }
  0x23   :  { %34 = dma.hbm_to_vmem [thread:$0]  %s434_s1, 4096, %s29_s27, [#allocation6], %s364_s0, %s364_s0, %s365_s9  }
  0x24   :  { %354 = dma.done.wait [#allocation3], 256  }
  0x25   :  { %355 = vsyncadd [#allocation3], 4294967040 }
  0x26   :  { %356 = dma.done.wait [#allocation6], 4096  }
  0x27   :  { %357 = vsyncadd [#allocation6], 4294963200  ;;  %v366_v0 = vmov 0.0   ;;  %v46_v1 = vld [vmem:[#allocation5 + $0x8] sm:$0xff]  ;;  %v48_v2 = vld [vmem:[#allocation5 + $0x18] sm:$0xff]  ;;  %v79_v51 = vlaneseq }
  0x28   :  { %153 = vmatprep.mubr.f32.mxu0 %v366_v0  ;;  %159 = vmatprep.mubr.f32.mxu1 %v366_v0  ;;  %v45_v3 = vld [vmem:[#allocation5] sm:$0xff]  ;;  %v220_v4 = vpack.c.bf16 %v48_v2, %v46_v1  ;;  %v47_v5 = vld [vmem:[#allocation5 + $0x10] sm:$0xff]  ;;  %v50_v6 = vld [vmem:[#allocation5 + $0x28] sm:$0xff] }
  0x29   :  { %v52_v7 = vld [vmem:[#allocation5 + $0x38] sm:$0xff]  ;;  %v222_v8 = vpack.c.bf16 %v47_v5, %v45_v3  ;;  %v49_v10 = vld [vmem:[#allocation5 + $0x20] sm:$0xff]  ;;  %v51_v11 = vld [vmem:[#allocation5 + $0x30] sm:$0xff]  ;;  %v80_v52 = vshrl.u32 %v79_v51, 7 }
  0x2a   :  { %v224_v9 = vpack.c.bf16 %v52_v7, %v50_v6  ;;  %v54_v12 = vld [vmem:[#allocation5 + $0x48] sm:$0xff]  ;;  %221 = vmatprep.subr.bf16.mxu0 %v220_v4  ;;  %252 = vmatprep.subr.bf16.mxu1 %v220_v4  ;;  %v56_v13 = vld [vmem:[#allocation5 + $0x58] sm:$0xff]  ;;  %v226_v14 = vpack.c.bf16 %v51_v11, %v49_v10  ;;  %v53_v16 = vld [vmem:[#allocation5 + $0x40] sm:$0xff] }
  0x2b   :  { %223 = vmatpush1.bf16.msra.mxu0 %v222_v8  ;;  %260 = vmatpush1.bf16.msra.mxu1 %v222_v8  ;;  %v228_v15 = vpack.c.bf16 %v56_v13, %v54_v12  ;;  %v55_v17 = vld [vmem:[#allocation5 + $0x50] sm:$0xff]  ;;  %v58_v18 = vld [vmem:[#allocation5 + $0x68] sm:$0xff]  ;;  %v60_v19 = vld [vmem:[#allocation5 + $0x78] sm:$0xff]  ;;  %v81_v53 = vsub.s32 0, %v80_v52  ;;  %v85_v55 = vsub.s32 1, %v80_v52 }
  0x2c   :  { %225 = vmatprep.subr.bf16.mxu0 %v224_v9  ;;  %253 = vmatprep.subr.bf16.mxu1 %v224_v9  ;;  %v230_v20 = vpack.c.bf16 %v55_v17, %v53_v16  ;;  %v232_v21 = vpack.c.bf16 %v60_v19, %v58_v18  ;;  %v57_v22 = vld [vmem:[#allocation5 + $0x60] sm:$0xff]  ;;  %v59_v23 = vld [vmem:[#allocation5 + $0x70] sm:$0xff]  ;;  %v62_v24 = vld [vmem:[#allocation5 + $0x88] sm:$0xff] }
  0x2d   :  { %v64_v25 = vld [vmem:[#allocation5 + $0x98] sm:$0xff]  ;;  %v234_v26 = vpack.c.bf16 %v59_v23, %v57_v22  ;;  %v61_v28 = vld [vmem:[#allocation5 + $0x80] sm:$0xff]  ;;  %v63_v29 = vld [vmem:[#allocation5 + $0x90] sm:$0xff] }
  0x2e   :  { %v236_v27 = vpack.c.bf16 %v64_v25, %v62_v24  ;;  %v66_v30 = vld [vmem:[#allocation5 + $0xa8] sm:$0xff]  ;;  %v68_v31 = vld [vmem:[#allocation5 + $0xb8] sm:$0xff]  ;;  %v238_v32 = vpack.c.bf16 %v63_v29, %v61_v28  ;;  %v65_v34 = vld [vmem:[#allocation5 + $0xa0] sm:$0xff] }
  0x2f   :  { %227 = vmatpush1.bf16.msra.mxu0 %v226_v14  ;;  %261 = vmatpush1.bf16.msra.mxu1 %v226_v14  ;;  %v240_v33 = vpack.c.bf16 %v68_v31, %v66_v30  ;;  %v67_v35 = vld [vmem:[#allocation5 + $0xb0] sm:$0xff]  ;;  %v70_v36 = vld [vmem:[#allocation5 + $0xc8] sm:$0xff]  ;;  %v72_v37 = vld [vmem:[#allocation5 + $0xd8] sm:$0xff] }
  0x30   :  { %229 = vmatprep.subr.bf16.mxu0 %v228_v15  ;;  %254 = vmatprep.subr.bf16.mxu1 %v228_v15  ;;  %v242_v38 = vpack.c.bf16 %v67_v35, %v65_v34  ;;  %v244_v39 = vpack.c.bf16 %v72_v37, %v70_v36  ;;  %v69_v40 = vld [vmem:[#allocation5 + $0xc0] sm:$0xff]  ;;  %v71_v41 = vld [vmem:[#allocation5 + $0xd0] sm:$0xff]  ;;  %v74_v42 = vld [vmem:[#allocation5 + $0xe8] sm:$0xff] }
  0x31   :  { %v76_v43 = vld [vmem:[#allocation5 + $0xf8] sm:$0xff]  ;;  %v246_v44 = vpack.c.bf16 %v71_v41, %v69_v40  ;;  %v73_v46 = vld [vmem:[#allocation5 + $0xe0] sm:$0xff]  ;;  %v75_v47 = vld [vmem:[#allocation5 + $0xf0] sm:$0xff] }
  0x32   :  { %v248_v45 = vpack.c.bf16 %v76_v43, %v74_v42  ;;  %v250_v48 = vpack.c.bf16 %v75_v47, %v73_v46  ;;  %v43_v49 = vld [vmem:[#allocation2] sm:$0xff]  ;;  %v44_v50 = vld [vmem:[#allocation2 + $0x8] sm:$0xff] }
  0x33   :  { %231 = vmatpush1.bf16.msra.mxu0 %v230_v20  ;;  %262 = vmatpush1.bf16.msra.mxu1 %v230_v20  ;;  %v77_v54 = vld [vmem:[%s435_s2] sm:$0x3]  ;;  %s367_s2 = smov [#allocation7]  }
  0x34   :  { %233 = vmatprep.subr.bf16.mxu0 %v232_v21  ;;  %255 = vmatprep.subr.bf16.mxu1 %v232_v21  ;;  %v82_v56 = vrot.slane %v77_v54, %v81_v53  ;;  %v86_v57 = vrot.slane %v77_v54, %v85_v55  ;;  %s207_s13 = sshll.u32 %s367_s2, 4  ;;  %s208_s13 = int_to_ptr.vmem [resolvable:$true] %s207_s13 }
  0x35   :  { %s332_s14 = scalar_lea.vmem %s208_s13, 512  ;;  %p337_p3 = scmp.lt.s32.totalorder %s208_s13, %s208_s13 }
  0x36   :  { %p333_p2 = scmp.ne.s32.totalorder %s208_s13, %s332_s14  ;;  %p338_p4 = scmp.lt.s32.totalorder %s332_s14, %s332_s14 }
  0x37   :  { %235 = vmatpush1.bf16.msra.mxu0 %v234_v26  ;;  %263 = vmatpush1.bf16.msra.mxu1 %v234_v26 }
  0x38   :  { %237 = vmatprep.subr.bf16.mxu0 %v236_v27  ;;  %256 = vmatprep.subr.bf16.mxu1 %v236_v27  ;;  %p339_p5 = por %p338_p4, %p337_p3 }
  0x3a   :  { %p340_p6 = pnand %p339_p5, %p333_p2 }
  0x3b   :  { %239 = vmatpush1.bf16.msra.mxu0 %v238_v32  ;;  %264 = vmatpush1.bf16.msra.mxu1 %v238_v32 }
  0x3c   :  { %241 = vmatprep.subr.bf16.mxu0 %v240_v33  ;;  %257 = vmatprep.subr.bf16.mxu1 %v240_v33 }
  0x3f   :  { %243 = vmatpush1.bf16.msra.mxu0 %v242_v38  ;;  %265 = vmatpush1.bf16.msra.mxu1 %v242_v38 }
  0x40   :  { %245 = vmatprep.subr.bf16.mxu0 %v244_v39  ;;  %258 = vmatprep.subr.bf16.mxu1 %v244_v39 }
  0x43   :  { %247 = vmatpush1.bf16.msra.mxu0 %v246_v44  ;;  %266 = vmatpush1.bf16.msra.mxu1 %v246_v44 }
  0x44   :  { %249 = vmatprep.subr.bf16.mxu0 %v248_v45  ;;  %259 = vmatprep.subr.bf16.mxu1 %v248_v45 }
  0x47   :  { %251 = vmatpush1.bf16.msra.mxu0 %v250_v48  ;;  %267 = vmatpush1.bf16.msra.mxu1 %v250_v48 }
  0x4a   :  { %154 = vmatmul.mubr.f32.vlgmr.msra.gmra.mrb[0].mxu0 %v43_v49  ;;  %160 = vmatmul.mubr.f32.vlgmr.msra.gmra.mrb[0].mxu1 %v44_v50 }
 0x11d   :  { %v155_v58 = vpop.f32.mrb[0].mxu0  ;;  %v161_v59 = vpop.f32.mrb[0].mxu1 }
 0x11e   :  { %v156_v60 = vadd.f32 %v155_v58, %v82_v56  ;;  %v157_v61 = vpop.f32.mrb[1].mxu0  ;;  %v163_v62 = vpop.f32.mrb[1].mxu1  ;;  %v162_v0 = vadd.f32 %v161_v59, %v82_v56 }
 0x11f   :  { %v158_v63 = vadd.f32 %v157_v61, %v86_v57  ;;  %v164_v1 = vadd.f32 %v163_v62, %v86_v57 }
 0x121   :  { %v166_v2 = vmax.f32 %v156_v60, %v158_v63  ;;  %v169_v3 = vmax.f32 %v162_v0, %v164_v1 }
 0x123   :  { %167 = vmax.xlane.f32.xlu0 %v166_v2 }
 0x127   :  { %170 = vmax.xlane.f32.xlu0 %v169_v3 }
 0x1b0   :  { %v168_v4 = vpop.xlane.xlu0 %167 }
 0x1b1   :  { %v172_v5 = vsub.f32 %v156_v60, %v168_v4  ;;  %v173_v6 = vsub.f32 %v158_v63, %v168_v4 }
 0x1b3   :  { %v176_v7 = vmul.f32 1.442695, %v172_v5  ;;  %v178_v8 = vmul.f32 1.442695, %v173_v6 }
 0x1b4   :  { %v171_v9 = vpop.xlane.xlu0 %170 }
 0x1b5   :  { %276 = vpow2.f32 %v176_v7  ;;  %v174_v10 = vsub.f32 %v162_v0, %v171_v9  ;;  %v175_v11 = vsub.f32 %v164_v1, %v171_v9 }
 0x1b6   :  { %278 = vpow2.f32 %v178_v8 }
 0x1b7   :  { %v180_v12 = vmul.f32 1.442695, %v174_v10  ;;  %v182_v13 = vmul.f32 1.442695, %v175_v11 }
 0x1b9   :  { %280 = vpow2.f32 %v180_v12 }
 0x1ba   :  { %282 = vpow2.f32 %v182_v13 }
 0x1bf   :  { %v277_v14 = vpop.eup %276 }
 0x1c0   :  { %v279_v15 = vpop.eup %278 }
 0x1c1   :  { %v184_v16 = vadd.f32 %v279_v15, %v277_v14 }
 0x1c3   :  { %v281_v17 = vpop.eup %280  ;;  %185 = vadd.xlane.f32.xlu1 %v184_v16 }
 0x1c4   :  { %v283_v18 = vpop.eup %282 }
 0x1c5   :  { %v187_v19 = vadd.f32 %v283_v18, %v281_v17 }
 0x1c7   :  { %188 = vadd.xlane.f32.xlu1 %v187_v19 }
 0x250   :  { %v186_v20 = vpop.xlane.xlu1 %185 }
 0x251   :  { %284 = vlog2.f32 %v186_v20 }
 0x254   :  { %v189_v21 = vpop.xlane.xlu1 %188 }
 0x255   :  { %286 = vlog2.f32 %v189_v21 }
 0x25b   :  { %v285_v22 = vpop.eup %284 }
 0x25c   :  { %v191_v23 = vmul.f32 0.6931472, %v285_v22 }
 0x25e   :  { %v194_v24 = vsub.f32 %v172_v5, %v191_v23  ;;  %v195_v25 = vsub.f32 %v173_v6, %v191_v23 }
 0x25f   :  { %v287_v26 = vpop.eup %286 }
 0x260   :  { %198 = vst [vmem:[#allocation7] sm:$0xff] %v194_v24  ;;  %199 = vst [vmem:[#allocation7 + $0x8] sm:$0xff] %v195_v25  ;;  %v193_v27 = vmul.f32 0.6931472, %v287_v26 }
 0x262   :  { %v196_v28 = vsub.f32 %v174_v10, %v193_v27  ;;  %v197_v29 = vsub.f32 %v175_v11, %v193_v27 }
 0x264   :  { %200 = vst [vmem:[#allocation7 + $0x10] sm:$0xff] %v196_v28  ;;  %201 = vst [vmem:[#allocation7 + $0x18] sm:$0xff] %v197_v29 }
 0x265   :  { %343 = shalt.err (!%p340_p6)
}
 0x266   :  { %s344_s17 = scalar_lea.hbm %s436_s3, 512 }
 0x267   :  { %p345_p7 = scmp.ne.s32.totalorder %s436_s3, %s344_s17  ;;  %p348_p8 = scmp.lt.u32.totalorder %s344_s17, %s436_s3 }
 0x269   :  { %p350_p9 = pnand %p348_p8, %p345_p7 }
 0x26b   :  { %353 = shalt.err (!%p350_p9)
}
 0x26c   :  { %213 = dma.vmem_to_hbm [thread:$0]  %s208_s13, 512, %s436_s3, [#allocation4], %s364_s0, %s364_s0, %s365_s9  }
 0x26d   :  { %358 = dma.done.wait [#allocation4], 512  }
 0x26e   :  { %359 = vsyncadd [#allocation4], 4294966784 }
 0x26f   :  { %217 = vsyncpa [#allocation3], 1 }
 0x270   :  { %218 = vsyncpa [#allocation6], 1 }
 0x271   :  { %219 = vsyncpa [#allocation4], 1 }

</bundles_post_ra>
